<compile_context>
chip_gen: v6e
topology: v6e:2x2x1
jax: 0.10.0
libtpu: 0.0.40
codegen_flags: <defaults>
</compile_context>

<pallas_src>
import functools

import jax
import jax.numpy as jnp
from jax import lax
from jax.experimental import pallas as pl
from jax.experimental.pallas import tpu as pltpu


def _round_up(v, m):
    return ((v + m - 1) // m) * m


# ----------------------------------------------------------------------------
# Fused kernel: one batch element per grid step.
#   x_ref      : [1, N, C]        (input dtype)
#   qkv_w_ref  : [3C, C]   bf16   (torch [out, in] layout, resident across grid)
#   proj_wt_ref: [H, D, C] bf16   (proj_w^T split per head, resident across grid)
#   proj_b_ref : [1, C]    f32
#   o_ref      : [1, N, C]        (input dtype)
#   qkv_scr    : [3H, N, D] bf16  (head-major q|k|v scratch)
#   acc_scr    : [N, C]     f32   (fused output-projection accumulator)
# ----------------------------------------------------------------------------
def _fused_attention_kernel(x_ref, qkv_w_ref, proj_wt_ref, proj_b_ref, o_ref,
                            qkv_scr, acc_scr, *, num_heads, scale):
    N, C = x_ref.shape[1], x_ref.shape[2]
    D = C // num_heads

    # ---- QKV projection: one full-width MXU matmul, bf16 operands, f32 accumulate.
    # Contract the shared "in" axis of both operands (NT) -> no weight transpose.
    x = x_ref[0].astype(jnp.bfloat16)                               # [N, C]
    qkv = lax.dot_general(x, qkv_w_ref[...],
                          (((1,), (1,)), ((), ())),
                          preferred_element_type=jnp.float32)       # [N, 3C] f32

    # Repack into head-major scratch [3H, N, D] (bf16).  Static loop of 3H slab
    # stores; afterwards the head loop only needs dynamic leading-dim indexing.
    for i in range(3 * num_heads):
        qkv_scr[i] = qkv[:, i * D:(i + 1) * D].astype(jnp.bfloat16)

    acc_scr[...] = jnp.zeros_like(acc_scr)

    # ---- Per-head attention + fused output projection.  fori_loop bounds live
    # ranges: only one head's [N, N] score/prob temporaries exist at a time.
    def head_body(h, carry):
        q = qkv_scr[h]                                              # [N, D] bf16
        k = qkv_scr[num_heads + h]                                  # [N, D] bf16
        v = qkv_scr[2 * num_heads + h]                              # [N, D] bf16

        # q k^T by contracting the head dim of both (NT) -> [N, N] f32 on the MXU.
        s = lax.dot_general(q, k, (((1,), (1,)), ((), ())),
                            preferred_element_type=jnp.float32) * scale
        # Softmax in f32 (v5e has no bf16 VPU/EUP); approx reciprocal -> EUP slot.
        s = s - jnp.max(s, axis=-1, keepdims=True)
        p = jnp.exp(s)
        p = p * pl.reciprocal(jnp.sum(p, axis=-1, keepdims=True), approx=True)

        o_h = jnp.dot(p.astype(jnp.bfloat16), v,
                      preferred_element_type=jnp.float32)           # [N, D] f32

        # Fused output projection for this head:
        #   y += o_h @ proj_w[:, hD:(h+1)D]^T  ==  o_h @ proj_wt_ref[h]   (NN matmul)
        # Accumulation goes into a full-lane-width f32 buffer -> no masked stores.
        acc_scr[...] += lax.dot_general(o_h.astype(jnp.bfloat16), proj_wt_ref[h],
                                        (((1,), (0,)), ((), ())),
                                        preferred_element_type=jnp.float32)
        return carry

    lax.fori_loop(0, num_heads, head_body, 0)

    # ---- Epilogue: bias in f32, single lane-dense [N, C] store.
    o_ref[0] = (acc_scr[...] + proj_b_ref[...]).astype(o_ref.dtype)


# ----------------------------------------------------------------------------
# Wrapper
# ----------------------------------------------------------------------------
def attention_forward(x, params, num_heads):
    """x: [B, N, C] -> [B, N, C]; matches PyTorch Attention.forward (eval)."""
    B, N, C = x.shape
    assert C % num_heads == 0
    D = C // num_heads
    scale = float(D) ** (-0.5)

    # bf16 weights: native MXU rate + half the weight HBM/VMEM bytes.
    qkv_w = params["qkv_w"].astype(jnp.bfloat16)                    # [3C, C] (torch layout)
    # Pre-transpose proj once outside the hot path and split its "in" axis per head.
    proj_wt = params["proj_w"].T.reshape(num_heads, D, C).astype(jnp.bfloat16)  # [H, D, C]
    proj_b = params["proj_b"].reshape(1, C).astype(jnp.float32)

    # Explicit VMEM budget (defaults: 16 MiB v5e / 32 MiB v6e+v7x scoped).
    itemsize = x.dtype.itemsize
    rows_n, lanes_c = _round_up(N, 8), _round_up(C, 128)
    lanes_3c, lanes_d = _round_up(3 * C, 128), _round_up(D, 128)
    vmem_need = (
        2 * 2 * rows_n * lanes_c * itemsize                  # x + o blocks, double-buffered
        + 2 * (3 * C) * lanes_c * 2                          # qkv_w bf16 (resident)
        + 2 * num_heads * _round_up(D, 8) * lanes_c * 2      # proj_wt bf16 (resident)
        + 2 * 8 * lanes_c * 4                                # bias
        + rows_n * lanes_3c * 4                              # staged f32 qkv value
        + 3 * num_heads * rows_n * lanes_d * 2               # head-major bf16 scratch
        + rows_n * lanes_c * 4                               # f32 accumulator
    )
    vmem_limit = int(min(max(vmem_need + (8 << 20), 32 << 20), 128 << 20))

    cost = pl.CostEstimate(
        flops=B * (2 * N * C * 3 * C + 4 * num_heads * N * N * D + 2 * N * C * C),
        transcendentals=B * num_heads * N * N,
        bytes_accessed=(2 * B * N * C * itemsize            # x in + y out
                        + (3 * C * C + C * C) * 2 + C * 4))  # weights + bias

    return pl.pallas_call(
        functools.partial(_fused_attention_kernel, num_heads=num_heads, scale=scale),
        out_shape=jax.ShapeDtypeStruct((B, N, C), x.dtype),
        grid=(B,),
        in_specs=[
            pl.BlockSpec((1, N, C), lambda b: (b, 0, 0)),
            pl.BlockSpec((3 * C, C), lambda b: (0, 0)),          # resident weight
            pl.BlockSpec((num_heads, D, C), lambda b: (0, 0, 0)),  # resident weight
            pl.BlockSpec((1, C), lambda b: (0, 0)),
        ],
        out_specs=pl.BlockSpec((1, N, C), lambda b: (b, 0, 0)),
        scratch_shapes=[
            pltpu.VMEM((3 * num_heads, N, D), jnp.bfloat16),
            pltpu.VMEM((N, C), jnp.float32),
        ],
        compiler_params=pltpu.CompilerParams(
            dimension_semantics=("parallel",),
            vmem_limit_bytes=vmem_limit),
        cost_estimate=cost,
    )(x, qkv_w, proj_wt, proj_b)


# ----------------------------------------------------------------------------
# Pure-JAX f32 reference for validation
# ----------------------------------------------------------------------------
def attention_reference(x, params, num_heads):
    B, N, C = x.shape
    D = C // num_heads
    scale = D ** (-0.5)
    qkv = x @ params["qkv_w"].T
    qkv = qkv.reshape(B, N, 3, num_heads, D).transpose(2, 0, 3, 1, 4)
    q, k, v = qkv[0], qkv[1], qkv[2]
    attn = jax.nn.softmax((q @ jnp.swapaxes(k, -2, -1)) * scale, axis=-1)
    o = (attn @ v).transpose(0, 2, 1, 3).reshape(B, N, C)
    return o @ params["proj_w"].T + params["proj_b"]


if __name__ == "__main__":
    # Small shapes consistent with the module: dim=C divisible by num_heads.
    B, N, C = 2, 16, 32
    num_heads = 4

    key = jax.random.PRNGKey(0)
    k_x, k_qkv, k_pw, k_pb = jax.random.split(key, 4)

    x = jax.random.normal(k_x, (B, N, C), dtype=jnp.float32)
    params = {
        # torch.nn.Linear weight layout: [out_features, in_features]
        "qkv_w": jax.random.normal(k_qkv, (3 * C, C), dtype=jnp.float32) * 0.05,
        "proj_w": jax.random.normal(k_pw, (C, C), dtype=jnp.float32) * 0.05,
        "proj_b": jax.random.normal(k_pb, (C,), dtype=jnp.float32) * 0.05,
    }

    out = jax.block_until_ready(attention_forward(x, params, num_heads))
    ref = attention_reference(x, params, num_heads)

    assert out.shape == (B, N, C)
    # bf16 MXU operands + approx reciprocal => compare with a loosened tolerance.
    rel_err = jnp.max(jnp.abs(out - ref)) / (jnp.max(jnp.abs(ref)) + 1e-6)
    assert rel_err < 2e-2, f"mismatch vs reference: rel_err={rel_err}"

    print("KERNEL_OK")
</pallas_src>

<mosaic_0001>
module attributes {stable_mosaic.version = 11 : i64} {
  func.func @_fused_attention_kernel(%arg0: i32, %arg1: memref<1x16x32xf32, #tpu.memory_space<vmem>>, %arg2: memref<96x32xbf16, #tpu.memory_space<vmem>>, %arg3: memref<4x8x32xbf16, #tpu.memory_space<vmem>>, %arg4: memref<1x32xf32, #tpu.memory_space<vmem>>, %arg5: memref<1x16x32xf32, #tpu.memory_space<vmem>>, %arg6: memref<12x16x8xbf16, #tpu.memory_space<vmem>>, %arg7: memref<16x32xf32, #tpu.memory_space<vmem>>) attributes {dimension_semantics = [#tpu.dimension_semantics<parallel>], iteration_bounds = array<i64: 2>, scalar_prefetch = 0 : i64, scratch_operands = 2 : i64, tpu.core_type = #tpu.core_type<tc>, window_params = [{transform_indices = @transform_0, window_bounds = array<i64: 1, 16, 32>}, {pipeline_mode = #tpu.pipeline_mode<synchronous>, transform_indices = @transform_1, window_bounds = array<i64: 96, 32>}, {pipeline_mode = #tpu.pipeline_mode<synchronous>, transform_indices = @transform_2, window_bounds = array<i64: 4, 8, 32>}, {pipeline_mode = #tpu.pipeline_mode<synchronous>, transform_indices = @transform_3, window_bounds = array<i64: 1, 32>}, {transform_indices = @transform_4, window_bounds = array<i64: 1, 16, 32>}]} {
    %c0 = arith.constant 0 : index
    %c0_0 = arith.constant 0 : index
    %c0_1 = arith.constant 0 : index
    %0 = vector.load %arg1[%c0, %c0_0, %c0_1] : memref<1x16x32xf32, #tpu.memory_space<vmem>>, vector<1x16x32xf32>
    %1 = vector.shape_cast %0 : vector<1x16x32xf32> to vector<16x32xf32>
    %2 = arith.truncf %1 : vector<16x32xf32> to vector<16x32xbf16>
    %c0_2 = arith.constant 0 : index
    %c0_3 = arith.constant 0 : index
    %3 = vector.load %arg2[%c0_2, %c0_3] : memref<96x32xbf16, #tpu.memory_space<vmem>>, vector<96x32xbf16>
    %cst = arith.constant dense<0.000000e+00> : vector<16x96xf32>
    %4 = tpu.matmul %2, %3, %cst {dimension_numbers = #tpu.dot_dimension_numbers<[1], [1], [0], [0], [0, 0, 1, 0], [], []>} : vector<16x32xbf16>, vector<96x32xbf16>, vector<16x96xf32> -> vector<16x96xf32>
    %5 = vector.extract_strided_slice %4 {offsets = [0, 0], sizes = [16, 8], strides = [1, 1]} : vector<16x96xf32> to vector<16x8xf32>
    %6 = arith.truncf %5 : vector<16x8xf32> to vector<16x8xbf16>
    %c0_4 = arith.constant 0 : index
    %c0_5 = arith.constant 0 : index
    %c0_6 = arith.constant 0 : index
    %7 = vector.load %arg6[%c0_4, %c0_5, %c0_6] : memref<12x16x8xbf16, #tpu.memory_space<vmem>>, vector<1x16x8xbf16>
    %8 = vector.shape_cast %7 : vector<1x16x8xbf16> to vector<16x8xbf16>
    %9 = vector.shape_cast %6 : vector<16x8xbf16> to vector<1x16x8xbf16>
    tpu.vector_store %arg6[%c0_4, %c0_5, %c0_6], %9 {strides = array<i32>} : memref<12x16x8xbf16, #tpu.memory_space<vmem>>, vector<1x16x8xbf16>,
    %10 = vector.extract_strided_slice %4 {offsets = [0, 8], sizes = [16, 8], strides = [1, 1]} : vector<16x96xf32> to vector<16x8xf32>
    %11 = arith.truncf %10 : vector<16x8xf32> to vector<16x8xbf16>
    %c1 = arith.constant 1 : index
    %c0_7 = arith.constant 0 : index
    %c0_8 = arith.constant 0 : index
    %12 = vector.load %arg6[%c1, %c0_7, %c0_8] : memref<12x16x8xbf16, #tpu.memory_space<vmem>>, vector<1x16x8xbf16>
    %13 = vector.shape_cast %12 : vector<1x16x8xbf16> to vector<16x8xbf16>
    %14 = vector.shape_cast %11 : vector<16x8xbf16> to vector<1x16x8xbf16>
    tpu.vector_store %arg6[%c1, %c0_7, %c0_8], %14 {strides = array<i32>} : memref<12x16x8xbf16, #tpu.memory_space<vmem>>, vector<1x16x8xbf16>,
    %15 = vector.extract_strided_slice %4 {offsets = [0, 16], sizes = [16, 8], strides = [1, 1]} : vector<16x96xf32> to vector<16x8xf32>
    %16 = arith.truncf %15 : vector<16x8xf32> to vector<16x8xbf16>
    %c2 = arith.constant 2 : index
    %c0_9 = arith.constant 0 : index
    %c0_10 = arith.constant 0 : index
    %17 = vector.load %arg6[%c2, %c0_9, %c0_10] : memref<12x16x8xbf16, #tpu.memory_space<vmem>>, vector<1x16x8xbf16>
    %18 = vector.shape_cast %17 : vector<1x16x8xbf16> to vector<16x8xbf16>
    %19 = vector.shape_cast %16 : vector<16x8xbf16> to vector<1x16x8xbf16>
    tpu.vector_store %arg6[%c2, %c0_9, %c0_10], %19 {strides = array<i32>} : memref<12x16x8xbf16, #tpu.memory_space<vmem>>, vector<1x16x8xbf16>,
    %20 = vector.extract_strided_slice %4 {offsets = [0, 24], sizes = [16, 8], strides = [1, 1]} : vector<16x96xf32> to vector<16x8xf32>
    %21 = arith.truncf %20 : vector<16x8xf32> to vector<16x8xbf16>
    %c3 = arith.constant 3 : index
    %c0_11 = arith.constant 0 : index
    %c0_12 = arith.constant 0 : index
    %22 = vector.load %arg6[%c3, %c0_11, %c0_12] : memref<12x16x8xbf16, #tpu.memory_space<vmem>>, vector<1x16x8xbf16>
    %23 = vector.shape_cast %22 : vector<1x16x8xbf16> to vector<16x8xbf16>
    %24 = vector.shape_cast %21 : vector<16x8xbf16> to vector<1x16x8xbf16>
    tpu.vector_store %arg6[%c3, %c0_11, %c0_12], %24 {strides = array<i32>} : memref<12x16x8xbf16, #tpu.memory_space<vmem>>, vector<1x16x8xbf16>,
    %25 = vector.extract_strided_slice %4 {offsets = [0, 32], sizes = [16, 8], strides = [1, 1]} : vector<16x96xf32> to vector<16x8xf32>
    %26 = arith.truncf %25 : vector<16x8xf32> to vector<16x8xbf16>
    %c4 = arith.constant 4 : index
    %c0_13 = arith.constant 0 : index
    %c0_14 = arith.constant 0 : index
    %27 = vector.load %arg6[%c4, %c0_13, %c0_14] : memref<12x16x8xbf16, #tpu.memory_space<vmem>>, vector<1x16x8xbf16>
    %28 = vector.shape_cast %27 : vector<1x16x8xbf16> to vector<16x8xbf16>
    %29 = vector.shape_cast %26 : vector<16x8xbf16> to vector<1x16x8xbf16>
    tpu.vector_store %arg6[%c4, %c0_13, %c0_14], %29 {strides = array<i32>} : memref<12x16x8xbf16, #tpu.memory_space<vmem>>, vector<1x16x8xbf16>,
    %30 = vector.extract_strided_slice %4 {offsets = [0, 40], sizes = [16, 8], strides = [1, 1]} : vector<16x96xf32> to vector<16x8xf32>
    %31 = arith.truncf %30 : vector<16x8xf32> to vector<16x8xbf16>
    %c5 = arith.constant 5 : index
    %c0_15 = arith.constant 0 : index
    %c0_16 = arith.constant 0 : index
    %32 = vector.load %arg6[%c5, %c0_15, %c0_16] : memref<12x16x8xbf16, #tpu.memory_space<vmem>>, vector<1x16x8xbf16>
    %33 = vector.shape_cast %32 : vector<1x16x8xbf16> to vector<16x8xbf16>
    %34 = vector.shape_cast %31 : vector<16x8xbf16> to vector<1x16x8xbf16>
    tpu.vector_store %arg6[%c5, %c0_15, %c0_16], %34 {strides = array<i32>} : memref<12x16x8xbf16, #tpu.memory_space<vmem>>, vector<1x16x8xbf16>,
    %35 = vector.extract_strided_slice %4 {offsets = [0, 48], sizes = [16, 8], strides = [1, 1]} : vector<16x96xf32> to vector<16x8xf32>
    %36 = arith.truncf %35 : vector<16x8xf32> to vector<16x8xbf16>
    %c6 = arith.constant 6 : index
    %c0_17 = arith.constant 0 : index
    %c0_18 = arith.constant 0 : index
    %37 = vector.load %arg6[%c6, %c0_17, %c0_18] : memref<12x16x8xbf16, #tpu.memory_space<vmem>>, vector<1x16x8xbf16>
    %38 = vector.shape_cast %37 : vector<1x16x8xbf16> to vector<16x8xbf16>
    %39 = vector.shape_cast %36 : vector<16x8xbf16> to vector<1x16x8xbf16>
    tpu.vector_store %arg6[%c6, %c0_17, %c0_18], %39 {strides = array<i32>} : memref<12x16x8xbf16, #tpu.memory_space<vmem>>, vector<1x16x8xbf16>,
    %40 = vector.extract_strided_slice %4 {offsets = [0, 56], sizes = [16, 8], strides = [1, 1]} : vector<16x96xf32> to vector<16x8xf32>
    %41 = arith.truncf %40 : vector<16x8xf32> to vector<16x8xbf16>
    %c7 = arith.constant 7 : index
    %c0_19 = arith.constant 0 : index
    %c0_20 = arith.constant 0 : index
    %42 = vector.load %arg6[%c7, %c0_19, %c0_20] : memref<12x16x8xbf16, #tpu.memory_space<vmem>>, vector<1x16x8xbf16>
    %43 = vector.shape_cast %42 : vector<1x16x8xbf16> to vector<16x8xbf16>
    %44 = vector.shape_cast %41 : vector<16x8xbf16> to vector<1x16x8xbf16>
    tpu.vector_store %arg6[%c7, %c0_19, %c0_20], %44 {strides = array<i32>} : memref<12x16x8xbf16, #tpu.memory_space<vmem>>, vector<1x16x8xbf16>,
    %45 = vector.extract_strided_slice %4 {offsets = [0, 64], sizes = [16, 8], strides = [1, 1]} : vector<16x96xf32> to vector<16x8xf32>
    %46 = arith.truncf %45 : vector<16x8xf32> to vector<16x8xbf16>
    %c8 = arith.constant 8 : index
    %c0_21 = arith.constant 0 : index
    %c0_22 = arith.constant 0 : index
    %47 = vector.load %arg6[%c8, %c0_21, %c0_22] : memref<12x16x8xbf16, #tpu.memory_space<vmem>>, vector<1x16x8xbf16>
    %48 = vector.shape_cast %47 : vector<1x16x8xbf16> to vector<16x8xbf16>
    %49 = vector.shape_cast %46 : vector<16x8xbf16> to vector<1x16x8xbf16>
    tpu.vector_store %arg6[%c8, %c0_21, %c0_22], %49 {strides = array<i32>} : memref<12x16x8xbf16, #tpu.memory_space<vmem>>, vector<1x16x8xbf16>,
    %50 = vector.extract_strided_slice %4 {offsets = [0, 72], sizes = [16, 8], strides = [1, 1]} : vector<16x96xf32> to vector<16x8xf32>
    %51 = arith.truncf %50 : vector<16x8xf32> to vector<16x8xbf16>
    %c9 = arith.constant 9 : index
    %c0_23 = arith.constant 0 : index
    %c0_24 = arith.constant 0 : index
    %52 = vector.load %arg6[%c9, %c0_23, %c0_24] : memref<12x16x8xbf16, #tpu.memory_space<vmem>>, vector<1x16x8xbf16>
    %53 = vector.shape_cast %52 : vector<1x16x8xbf16> to vector<16x8xbf16>
    %54 = vector.shape_cast %51 : vector<16x8xbf16> to vector<1x16x8xbf16>
    tpu.vector_store %arg6[%c9, %c0_23, %c0_24], %54 {strides = array<i32>} : memref<12x16x8xbf16, #tpu.memory_space<vmem>>, vector<1x16x8xbf16>,
    %55 = vector.extract_strided_slice %4 {offsets = [0, 80], sizes = [16, 8], strides = [1, 1]} : vector<16x96xf32> to vector<16x8xf32>
    %56 = arith.truncf %55 : vector<16x8xf32> to vector<16x8xbf16>
    %c10 = arith.constant 10 : index
    %c0_25 = arith.constant 0 : index
    %c0_26 = arith.constant 0 : index
    %57 = vector.load %arg6[%c10, %c0_25, %c0_26] : memref<12x16x8xbf16, #tpu.memory_space<vmem>>, vector<1x16x8xbf16>
    %58 = vector.shape_cast %57 : vector<1x16x8xbf16> to vector<16x8xbf16>
    %59 = vector.shape_cast %56 : vector<16x8xbf16> to vector<1x16x8xbf16>
    tpu.vector_store %arg6[%c10, %c0_25, %c0_26], %59 {strides = array<i32>} : memref<12x16x8xbf16, #tpu.memory_space<vmem>>, vector<1x16x8xbf16>,
    %60 = vector.extract_strided_slice %4 {offsets = [0, 88], sizes = [16, 8], strides = [1, 1]} : vector<16x96xf32> to vector<16x8xf32>
    %61 = arith.truncf %60 : vector<16x8xf32> to vector<16x8xbf16>
    %c11 = arith.constant 11 : index
    %c0_27 = arith.constant 0 : index
    %c0_28 = arith.constant 0 : index
    %62 = vector.load %arg6[%c11, %c0_27, %c0_28] : memref<12x16x8xbf16, #tpu.memory_space<vmem>>, vector<1x16x8xbf16>
    %63 = vector.shape_cast %62 : vector<1x16x8xbf16> to vector<16x8xbf16>
    %64 = vector.shape_cast %61 : vector<16x8xbf16> to vector<1x16x8xbf16>
    tpu.vector_store %arg6[%c11, %c0_27, %c0_28], %64 {strides = array<i32>} : memref<12x16x8xbf16, #tpu.memory_space<vmem>>, vector<1x16x8xbf16>,
    %cst_29 = arith.constant 0.000000e+00 : f32
    %65 = vector.broadcast %cst_29 : f32 to vector<16x32xf32>
    %c0_30 = arith.constant 0 : index
    %c0_31 = arith.constant 0 : index
    %66 = vector.load %arg7[%c0_30, %c0_31] : memref<16x32xf32, #tpu.memory_space<vmem>>, vector<16x32xf32>
    tpu.vector_store %arg7[%c0_30, %c0_31], %65 {strides = array<i32>} : memref<16x32xf32, #tpu.memory_space<vmem>>, vector<16x32xf32>,
    %c0_i32 = arith.constant 0 : i32
    %c4_i32 = arith.constant 4 : i32
    %67 = arith.addi %c0_i32, %c4_i32 : i32
    %c1_i32 = arith.constant 1 : i32
    scf.for %arg8 = %c0_i32 to %67 step %c1_i32  : i32 {
      %75 = arith.index_cast %arg8 : i32 to index
      %c0_40 = arith.constant 0 : index
      %c0_41 = arith.constant 0 : index
      %76 = vector.load %arg6[%75, %c0_40, %c0_41] : memref<12x16x8xbf16, #tpu.memory_space<vmem>>, vector<1x16x8xbf16>
      %77 = vector.shape_cast %76 : vector<1x16x8xbf16> to vector<16x8xbf16>
      %c4_i32_42 = arith.constant 4 : i32
      %78 = arith.addi %c4_i32_42, %arg8 : i32
      %79 = arith.index_cast %78 : i32 to index
      %c0_43 = arith.constant 0 : index
      %c0_44 = arith.constant 0 : index
      %80 = vector.load %arg6[%79, %c0_43, %c0_44] : memref<12x16x8xbf16, #tpu.memory_space<vmem>>, vector<1x16x8xbf16>
      %81 = vector.shape_cast %80 : vector<1x16x8xbf16> to vector<16x8xbf16>
      %c8_i32 = arith.constant 8 : i32
      %82 = arith.addi %c8_i32, %arg8 : i32
      %83 = arith.index_cast %82 : i32 to index
      %c0_45 = arith.constant 0 : index
      %c0_46 = arith.constant 0 : index
      %84 = vector.load %arg6[%83, %c0_45, %c0_46] : memref<12x16x8xbf16, #tpu.memory_space<vmem>>, vector<1x16x8xbf16>
      %85 = vector.shape_cast %84 : vector<1x16x8xbf16> to vector<16x8xbf16>
      %cst_47 = arith.constant dense<0.000000e+00> : vector<16x16xf32>
      %86 = tpu.matmul %77, %81, %cst_47 {dimension_numbers = #tpu.dot_dimension_numbers<[1], [1], [0], [0], [0, 0, 1, 0], [], []>} : vector<16x8xbf16>, vector<16x8xbf16>, vector<16x16xf32> -> vector<16x16xf32>
      %cst_48 = arith.constant 0.353553385 : f32
      %87 = vector.broadcast %cst_48 : f32 to vector<16x16xf32>
      %88 = arith.mulf %86, %87 : vector<16x16xf32>
      %cst_49 = arith.constant dense<0xFF800000> : vector<16xf32>
      %89 = vector.multi_reduction <maximumf>, %88, %cst_49 [1] : vector<16x16xf32> to vector<16xf32>
      %90 = vector.shape_cast %89 : vector<16xf32> to vector<16x1xf32>
      %91 = vector.broadcast %90 : vector<16x1xf32> to vector<16x16xf32>
      %92 = arith.subf %88, %91 : vector<16x16xf32>
      %93 = math.exp %92 : vector<16x16xf32>
      %cst_50 = arith.constant dense<0.000000e+00> : vector<16xf32>
      %94 = vector.multi_reduction <add>, %93, %cst_50 [1] : vector<16x16xf32> to vector<16xf32>
      %95 = vector.shape_cast %94 : vector<16xf32> to vector<16x1xf32>
      %96 = tpu.reciprocal %95 {approx = true} : vector<16x1xf32> -> vector<16x1xf32>
      %97 = vector.broadcast %96 : vector<16x1xf32> to vector<16x16xf32>
      %98 = arith.mulf %93, %97 : vector<16x16xf32>
      %99 = arith.truncf %98 : vector<16x16xf32> to vector<16x16xbf16>
      %cst_51 = arith.constant dense<0.000000e+00> : vector<16x8xf32>
      %100 = tpu.matmul %99, %85, %cst_51 {dimension_numbers = #tpu.dot_dimension_numbers<[1], [0], [0], [1], [0, 0, 1, 1], [], []>} : vector<16x16xbf16>, vector<16x8xbf16>, vector<16x8xf32> -> vector<16x8xf32>
      %c0_52 = arith.constant 0 : index
      %c0_53 = arith.constant 0 : index
      %101 = vector.load %arg7[%c0_52, %c0_53] : memref<16x32xf32, #tpu.memory_space<vmem>>, vector<16x32xf32>
      %102 = arith.truncf %100 : vector<16x8xf32> to vector<16x8xbf16>
      %103 = arith.index_cast %arg8 : i32 to index
      %c0_54 = arith.constant 0 : index
      %c0_55 = arith.constant 0 : index
      %104 = vector.load %arg3[%103, %c0_54, %c0_55] : memref<4x8x32xbf16, #tpu.memory_space<vmem>>, vector<1x8x32xbf16>
      %105 = vector.shape_cast %104 : vector<1x8x32xbf16> to vector<8x32xbf16>
      %cst_56 = arith.constant dense<0.000000e+00> : vector<16x32xf32>
      %106 = tpu.matmul %102, %105, %cst_56 {dimension_numbers = #tpu.dot_dimension_numbers<[1], [0], [0], [1], [0, 0, 1, 1], [], []>} : vector<16x8xbf16>, vector<8x32xbf16>, vector<16x32xf32> -> vector<16x32xf32>
      %107 = arith.addf %101, %106 : vector<16x32xf32>
      %c0_57 = arith.constant 0 : index
      %c0_58 = arith.constant 0 : index
      %108 = vector.load %arg7[%c0_57, %c0_58] : memref<16x32xf32, #tpu.memory_space<vmem>>, vector<16x32xf32>
      tpu.vector_store %arg7[%c0_57, %c0_58], %107 {strides = array<i32>} : memref<16x32xf32, #tpu.memory_space<vmem>>, vector<16x32xf32>,
    }
    %c4_i32_32 = arith.constant 4 : i32
    %c0_33 = arith.constant 0 : index
    %c0_34 = arith.constant 0 : index
    %68 = vector.load %arg7[%c0_33, %c0_34] : memref<16x32xf32, #tpu.memory_space<vmem>>, vector<16x32xf32>
    %c0_35 = arith.constant 0 : index
    %c0_36 = arith.constant 0 : index
    %69 = vector.load %arg4[%c0_35, %c0_36] : memref<1x32xf32, #tpu.memory_space<vmem>>, vector<1x32xf32>
    %70 = vector.broadcast %69 : vector<1x32xf32> to vector<16x32xf32>
    %71 = arith.addf %68, %70 : vector<16x32xf32>
    %c0_37 = arith.constant 0 : index
    %c0_38 = arith.constant 0 : index
    %c0_39 = arith.constant 0 : index
    %72 = vector.load %arg5[%c0_37, %c0_38, %c0_39] : memref<1x16x32xf32, #tpu.memory_space<vmem>>, vector<1x16x32xf32>
    %73 = vector.shape_cast %72 : vector<1x16x32xf32> to vector<16x32xf32>
    %74 = vector.shape_cast %71 : vector<16x32xf32> to vector<1x16x32xf32>
    tpu.vector_store %arg5[%c0_37, %c0_38, %c0_39], %74 {strides = array<i32>} : memref<1x16x32xf32, #tpu.memory_space<vmem>>, vector<1x16x32xf32>,
    return
  }
  func.func @transform_0(%arg0: i32) -> (i32, i32, i32) {
    %c0_i32 = arith.constant 0 : i32
    %c0_i32_0 = arith.constant 0 : i32
    %c0_i32_1 = arith.constant 0 : i32
    return %arg0, %c0_i32, %c0_i32_0 : i32, i32, i32
  }
  func.func @transform_1(%arg0: i32) -> (i32, i32) {
    %c0_i32 = arith.constant 0 : i32
    %c0_i32_0 = arith.constant 0 : i32
    %c0_i32_1 = arith.constant 0 : i32
    return %c0_i32, %c0_i32_0 : i32, i32
  }
  func.func @transform_2(%arg0: i32) -> (i32, i32, i32) {
    %c0_i32 = arith.constant 0 : i32
    %c0_i32_0 = arith.constant 0 : i32
    %c0_i32_1 = arith.constant 0 : i32
    %c0_i32_2 = arith.constant 0 : i32
    return %c0_i32, %c0_i32_0, %c0_i32_1 : i32, i32, i32
  }
  func.func @transform_3(%arg0: i32) -> (i32, i32) {
    %c0_i32 = arith.constant 0 : i32
    %c0_i32_0 = arith.constant 0 : i32
    %c0_i32_1 = arith.constant 0 : i32
    return %c0_i32, %c0_i32_0 : i32, i32
  }
  func.func @transform_4(%arg0: i32) -> (i32, i32, i32) {
    %c0_i32 = arith.constant 0 : i32
    %c0_i32_0 = arith.constant 0 : i32
    %c0_i32_1 = arith.constant 0 : i32
    return %arg0, %c0_i32, %c0_i32_0 : i32, i32, i32
  }
}

</mosaic_0001>

<bundles_post_ra>
// kernel: tpu_custom_call.1
= control target key start
LH: loop header
LB: loop body
LE: loop exit
PB: predicated region body
PF: predicated region fallthrough
CT: control target
= control target key end

     0   :  { %9 = vsyncpa [#allocation5], 0  ;;  %s1222_s0 = inlined_call_operand.vmem [shape: f32[2,16,32], index: 0, kind: input, shape index: {}]   ;;  %s1223_s1 = inlined_call_operand.vmem [shape: bf16[96,32], index: 1, kind: input, shape index: {}]   ;;  %s1224_s2 = inlined_call_operand.vmem [shape: bf16[4,8,32], index: 2, kind: input, shape index: {}]   ;;  %s1225_s3 = inlined_call_operand.vmem [shape: f32[1,32], index: 3, kind: input, shape index: {}]   ;;  %s1226_s4 = inlined_call_operand.hbm [shape: f32[2,16,32], index: 4, kind: output, shape index: {}]  }
   0x1   :  { %11 = vsyncpa [#allocation5 + $0x1], 0  ;;  %s1019_s15 = smov 0   ;;  %s1021_s16 = smov 0  }
   0x2   :  { %s1023_s17 = smov 0   ;;  %s1025_s18 = smov 0  }
   0x3 LB: > { %s1040_s19 = sadd.s32 4294967295, %s970_s18   ;;  %s736_s20 = sadd.s32 4294967294, %s970_s18   ;;  %s970_s18 = sphi %s1025_s18, %s1232_s18   ;;  %s966_s17 = sphi %s1023_s17, %s1231_s17   ;;  %s962_s16 = sphi %s1021_s16, %s1230_s16   ;;  %s958_s15 = sphi %s1019_s15, %s1229_s15  }
   0x4   : > { %s1044_s21 = sadd.s32 1, %s970_s18   ;;  %s113_s22 = sadd.s32 1, %s966_s17 }
   0x5   : > { %s110_s23 = ssub.s32 %s970_s18, %s1044_s21  ;;  %p123_p0 = scmp.ne.s32.totalorder %s966_s17, %s962_s16 }
   0x6   : > { %p111_p1 = scmp.eq.s32.totalorder %s110_s23, 0  ;;  %p124_p2 = scmp.eq.s32.totalorder %s1040_s19, 1 }
   0x7   : > { %p129_p3 = scmp.ne.s32.totalorder %s962_s16, %s958_s15  ;;  %p130_p4 = scmp.eq.s32.totalorder %s736_s20, 1 }
   0x8   : > { %s1055_s24 = scalar_select %p111_p1, %s966_s17, %s113_s22  }
   0x9   : > { %p1057_p5 = por %p124_p2, %p123_p0  ;;  %p1061_p6 = por %p130_p4, %p129_p3 }
   0xa   : > { %p739_p7 = scmp.ge.s32.totalorder %s970_s18, 1  ;;  %p165_p8 = scmp.lt.s32.totalorder %s970_s18, 3 }
   0xc   : > { %p166_p9 = pnand %p739_p7, %p165_p8 }
   0xd   : > { %s188_s27 = sand.u32 (!%p166_p9), 1, %s962_s16   ;;  %p191_p10 = scmp.lt.s32.totalorder (!%p166_p9), %s1040_s19, 1 }
   0xe   : > { %169 = sbr.rel (%p166_p9) target bundleno = 1369 (0x559), region = 36  ;;  %s1070_s28 = sshll.u32 (!%p166_p9), %s188_s27, 4 }
   0xf   : > { %s978_s5 = smov (!%p166_p9), 112   ;;  %s979_s6 = smov (!%p166_p9), 120  }
  0x10   : > { %s980_s7 = smov (!%p166_p9), 104   ;;  %s981_s8 = smov (!%p166_p9), 96  }
  0x11   : > { %s982_s9 = smov (!%p166_p9), 88   ;;  %s983_s10 = smov (!%p166_p9), 80  }
  0x12   : > { %s984_s11 = smov (!%p166_p9), 72   ;;  %s985_s12 = smov (!%p166_p9), 64  }
  0x13   : > { %v976_v0 = vmov 0.0   ;;  %v889_v1 = vld [vmem:[%s1223_s1 + $0x28] sm:$0xff]   ;;  %vm242_vm0 = vcmask 261120   ;;  %v890_v3 = vld [vmem:[%s1223_s1 + $0x20] sm:$0xff]   ;;  %vm977_vm1 = vmmov 0   ;;  %v891_v5 = vld [vmem:[%s1223_s1 + $0x18] sm:$0xff]  }
  0x14   : > { %791 = vmatprep.subr.bf16.mxu0 %v976_v0  ;;  %415 = vst.msk [vmem:[#allocation3] sm:$0xff] %vm242_vm0, %v976_v0  ;;  %416 = vst.msk [vmem:[#allocation3 + $0x8] sm:$0xff] %vm242_vm0, %v976_v0  ;;  %v262_v2 = vsel %vm242_vm0, %v889_v1, 0  ;;  %803 = vmatprep.mubr.msk.bf16.mxu0 %vm977_vm1, %v976_v0  ;;  %v259_v4 = vsel %vm242_vm0, %v890_v3, 0  ;;  %v256_v6 = vsel %vm242_vm0, %v891_v5, 0  ;;  %v892_v7 = vld [vmem:[%s1223_s1 + $0x10] sm:$0xff]  }
  0x15   : > { %792 = vmatpush3.bf16.xpose.msra.mxu0 %v262_v2  ;;  %v253_v8 = vsel %vm242_vm0, %v892_v7, 0  ;;  %v893_v9 = vld [vmem:[%s1223_s1 + $0x8] sm:$0xff]   ;;  %s192_s13 = scalar_select %p191_p10, %s1040_s19, 1  ;;  %v894_v11 = vld [vmem:[%s1223_s1] sm:$0xff]   ;;  %vm313_vm2 = vcmask 60416  }
  0x16   : > { %793 = vmatprep.subr.bf16.mxu0 %v976_v0  ;;  %v250_v10 = vsel %vm242_vm0, %v893_v9, 0  ;;  %v247_v12 = vsel %vm242_vm0, %v894_v11, 0  ;;  %s987_s14 = smov 48   ;;  %s988_s20 = smov 40  }
  0x17   : > { %s773_s22 = sshll.u32 %s192_s13, 4  ;;  %s986_s13 = smov 56  }
  0x18   : > { %s195_s30 = scalar_lea.vmem %s1222_s0, %s773_s22  ;;  %s1131_s22 = scalar_lea.vmem [#allocation4], %s1070_s28 }
  0x19   : > { %v197_v13 = vld [vmem:[%s195_s30] sm:$0xff]  ;;  %v198_v14 = vld [vmem:[%s195_s30 + $0x8] sm:$0xff]  ;;  %s1133_s23 = smov 0  }
  0x1a   : > { %v199_v15 = vpack.c.bf16 %v198_v14, %v197_v13 }
  0x1d   : > { %794 = vmatpush3.bf16.xpose.msra.mxu0 %v259_v4 }
  0x1e   : > { %795 = vmatprep.subr.bf16.mxu0 %v976_v0 }
  0x25   : > { %796 = vmatpush3.bf16.xpose.msra.mxu0 %v256_v6 }
  0x26   : > { %797 = vmatprep.subr.bf16.mxu0 %v976_v0 }
  0x2d   : > { %798 = vmatpush3.bf16.xpose.msra.mxu0 %v253_v8 }
  0x2e   : > { %799 = vmatprep.subr.bf16.mxu0 %v976_v0 }
  0x35   : > { %800 = vmatpush3.bf16.xpose.msra.mxu0 %v250_v10 }
  0x36   : > { %801 = vmatprep.subr.bf16.mxu0 %v976_v0 }
  0x3d   : > { %802 = vmatpush3.bf16.xpose.msra.mxu0 %v247_v12 }
  0x44   : > { %804 = vmatmul.mubr.msk.bf16.vlgmr.msra.gmra.mxu0 %vm242_vm0, %v199_v15 }
 0x104   : > { %v298_v16 = vpop.f32.mrf.mxu0 }
 0x105   : > { %v774_v17 = vpack.c.bf16 %v298_v16, %v298_v16 }
 0x106   : > { %v805_v18 = vpop.f32.mrf.mxu0 }
 0x107   : > { %314 = vst.msk [vmem:[#allocation2] sm:$0xf] %vm313_vm2, %v774_v17  ;;  %325 = vrot.lane.b32.xlu1 %v774_v17, %s978_s5  ;;  %316 = vrot.lane.b32.xlu0 %v774_v17, %s979_s6 }
 0x108   : > { %v301_v19 = vpop.f32.mrf.mxu0 }
 0x109   : > { %v775_v20 = vpack.c.bf16 %v301_v19, %v301_v19 }
 0x10a   : > { %v806_v21 = vpop.f32.mrf.mxu0 }
 0x10b   : > { %315 = vst.msk [vmem:[#allocation2 + $0x4] sm:$0xf] %vm313_vm2, %v775_v20  ;;  %334 = vrot.lane.b32.xlu0 %v774_v17, %s980_s7  ;;  %327 = vrot.lane.b32.xlu1 %v775_v20, %s978_s5 }
 0x10f   : > { %343 = vrot.lane.b32.xlu0 %v774_v17, %s981_s8  ;;  %336 = vrot.lane.b32.xlu1 %v775_v20, %s980_s7 }
 0x113   : > { %352 = vrot.lane.b32.xlu0 %v774_v17, %s982_s9  ;;  %345 = vrot.lane.b32.xlu1 %v775_v20, %s981_s8 }
 0x117   : > { %361 = vrot.lane.b32.xlu0 %v774_v17, %s983_s10  ;;  %354 = vrot.lane.b32.xlu1 %v775_v20, %s982_s9 }
 0x11b   : > { %370 = vrot.lane.b32.xlu0 %v774_v17, %s984_s11  ;;  %363 = vrot.lane.b32.xlu1 %v775_v20, %s983_s10 }
 0x11f   : > { %379 = vrot.lane.b32.xlu0 %v774_v17, %s985_s12  ;;  %372 = vrot.lane.b32.xlu1 %v775_v20, %s984_s11 }
 0x123   : > { %388 = vrot.lane.b32.xlu0 %v774_v17, %s986_s13  ;;  %381 = vrot.lane.b32.xlu1 %v775_v20, %s985_s12 }
 0x127   : > { %397 = vrot.lane.b32.xlu0 %v774_v17, %s987_s14  ;;  %390 = vrot.lane.b32.xlu1 %v775_v20, %s986_s13 }
 0x12b   : > { %399 = vrot.lane.b32.xlu1 %v775_v20, %s987_s14  ;;  %318 = vrot.lane.b32.xlu0 %v775_v20, %s979_s6 }
 0x12f   : > { %408 = vrot.lane.b32.xlu1 %v775_v20, %s988_s20  ;;  %406 = vrot.lane.b32.xlu0 %v774_v17, %s988_s20 }
 0x179   : > { %v326_v22 = vpop.permute.xlu1 %325  ;;  %v317_v23 = vpop.permute.xlu0 %316 }
 0x17a   : > { %332 = vst.msk [vmem:[#allocation2 + $0x10] sm:$0xf] %vm313_vm2, %v326_v22  ;;  %323 = vst.msk [vmem:[#allocation2 + $0x8] sm:$0xf] %vm313_vm2, %v317_v23 }
 0x17d   : > { %v335_v24 = vpop.permute.xlu0 %334  ;;  %v328_v25 = vpop.permute.xlu1 %327 }
 0x17e   : > { %341 = vst.msk [vmem:[#allocation2 + $0x18] sm:$0xf] %vm313_vm2, %v335_v24  ;;  %333 = vst.msk [vmem:[#allocation2 + $0x14] sm:$0xf] %vm313_vm2, %v328_v25 }
 0x181   : > { %v344_v26 = vpop.permute.xlu0 %343  ;;  %v337_v27 = vpop.permute.xlu1 %336 }
 0x182   : > { %350 = vst.msk [vmem:[#allocation2 + $0x20] sm:$0xf] %vm313_vm2, %v344_v26  ;;  %342 = vst.msk [vmem:[#allocation2 + $0x1c] sm:$0xf] %vm313_vm2, %v337_v27 }
 0x185   : > { %v353_v28 = vpop.permute.xlu0 %352  ;;  %v346_v29 = vpop.permute.xlu1 %345 }
 0x186   : > { %359 = vst.msk [vmem:[#allocation2 + $0x28] sm:$0xf] %vm313_vm2, %v353_v28  ;;  %351 = vst.msk [vmem:[#allocation2 + $0x24] sm:$0xf] %vm313_vm2, %v346_v29 }
 0x189   : > { %v362_v30 = vpop.permute.xlu0 %361  ;;  %v355_v31 = vpop.permute.xlu1 %354 }
 0x18a   : > { %368 = vst.msk [vmem:[#allocation2 + $0x30] sm:$0xf] %vm313_vm2, %v362_v30  ;;  %360 = vst.msk [vmem:[#allocation2 + $0x2c] sm:$0xf] %vm313_vm2, %v355_v31 }
 0x18d   : > { %v371_v32 = vpop.permute.xlu0 %370  ;;  %v364_v33 = vpop.permute.xlu1 %363 }
 0x18e   : > { %377 = vst.msk [vmem:[#allocation2 + $0x38] sm:$0xf] %vm313_vm2, %v371_v32  ;;  %369 = vst.msk [vmem:[#allocation2 + $0x34] sm:$0xf] %vm313_vm2, %v364_v33 }
 0x191   : > { %v380_v34 = vpop.permute.xlu0 %379  ;;  %v373_v35 = vpop.permute.xlu1 %372 }
 0x192   : > { %386 = vst.msk [vmem:[#allocation2 + $0x40] sm:$0xf] %vm313_vm2, %v380_v34  ;;  %378 = vst.msk [vmem:[#allocation2 + $0x3c] sm:$0xf] %vm313_vm2, %v373_v35 }
 0x195   : > { %v389_v36 = vpop.permute.xlu0 %388  ;;  %v382_v37 = vpop.permute.xlu1 %381 }
 0x196   : > { %395 = vst.msk [vmem:[#allocation2 + $0x48] sm:$0xf] %vm313_vm2, %v389_v36  ;;  %387 = vst.msk [vmem:[#allocation2 + $0x44] sm:$0xf] %vm313_vm2, %v382_v37 }
 0x199   : > { %v398_v38 = vpop.permute.xlu0 %397  ;;  %v391_v39 = vpop.permute.xlu1 %390 }
 0x19a   : > { %404 = vst.msk [vmem:[#allocation2 + $0x50] sm:$0xf] %vm313_vm2, %v398_v38  ;;  %396 = vst.msk [vmem:[#allocation2 + $0x4c] sm:$0xf] %vm313_vm2, %v391_v39 }
 0x19d   : > { %v400_v40 = vpop.permute.xlu1 %399  ;;  %v319_v41 = vpop.permute.xlu0 %318 }
 0x19e   : > { %405 = vst.msk [vmem:[#allocation2 + $0x54] sm:$0xf] %vm313_vm2, %v400_v40  ;;  %324 = vst.msk [vmem:[#allocation2 + $0xc] sm:$0xf] %vm313_vm2, %v319_v41 }
 0x1a1   : > { %v409_v42 = vpop.permute.xlu1 %408  ;;  %v407_v43 = vpop.permute.xlu0 %406 }
 0x1a2   : > { %414 = vst.msk [vmem:[#allocation2 + $0x5c] sm:$0xf] %vm313_vm2, %v409_v42  ;;  %413 = vst.msk [vmem:[#allocation2 + $0x58] sm:$0xf] %vm313_vm2, %v407_v43 }
 0x1a3 LB: >> { %v989_v44 = vmov 0.0   ;;  %vm990_vm3 = vmmov 0   ;;  %s776_s29 = sshll.u32 %s974_s23, 3  ;;  %vm450_vm4 = vcmask 64512   ;;  %vm500_vm5 = vcmask 130048   ;;  %s765_s30 = sshll.u32 %s974_s23, 2  ;;  %s974_s23 = sphi %s1133_s23, %s422_s23  }
 0x1a4   : >> { %807 = vmatprep.subr.bf16.mxu0 %v989_v44  ;;  %809 = vmatprep.mubr.msk.bf16.mxu0 %vm990_vm3, %v989_v44  ;;  %s1141_s28 = scalar_lea.vmem [#allocation2], %s776_s29  ;;  %s578_s7 = scalar_lea.vmem %s1224_s2, %s765_s30  ;;  %vm583_vm6 = vcmask 1043456   ;;  %v574_v17 = vld [vmem:[#allocation3] sm:$0xff]  ;;  %v575_v21 = vld [vmem:[#allocation3 + $0x8] sm:$0xff] }
 0x1a5   : >> { %813 = vmatprep.subr.bf16.mxu1 %v989_v44  ;;  %815 = vmatprep.mubr.msk.bf16.mxu1 %vm990_vm3, %v989_v44  ;;  %v579_v7 = vld [vmem:[%s578_s7] sm:$0xf]  ;;  %s422_s23 = sadd.s32 1, %s974_s23  }
 0x1a6   : >> { %v585_v11 = vsel %vm583_vm6, %v579_v7, 0  ;;  %p419_p11 = scmp.ge.s32.totalorder %s422_s23, 4  }
 0x1a7   : > { %v767_v26 = vld [vmem:[%s1225_s3] ss:$0 sm:$0xff] (%p419_p11)  ;;  %s777_s10 = sshll.u32 (%p419_p11), %s1040_s19, 8  ;;  %s659_s14 = sshll.u32 (%p419_p11), %s1131_s22, 4  ;;  %s1174_s14 = int_to_ptr.vmem [resolvable:$true] %s659_s14 }
 0x1a8   : > { %s1171_s13 = scalar_lea.hbm (%p419_p11), %s1226_s4, %s777_s10  ;;  %s1182_s20 = scalar_lea.sflag (%p419_p11), [#allocation5], %s188_s27 }
 0x1a9   : >> { %v895_v45 = vld [vmem:[%s1141_s28 + $0x20] sm:$0xff]   ;;  %s906_s19 = scalar_lea.vmem (%p419_p11), %s1174_s14, 256  ;;  %s991_s23 = smov (%p419_p11), [#allocation4]  }
 0x1aa   : >> { %v455_v46 = vsel %vm450_vm4, %v895_v45, 0  ;;  %v896_v47 = vld [vmem:[%s1141_s28] sm:$0xff]   ;;  %p907_p12 = scmp.ne.s32.totalorder (%p419_p11), %s1174_s14, %s906_s19  ;;  %s910_s29 = sshll.u32 (%p419_p11), %s991_s23, 4  ;;  %s911_s29 = int_to_ptr.vmem [resolvable:$false] %s910_s29 }
 0x1ab   : >> { %808 = vmatpush3.bf16.xpose.msra.mxu0 %v455_v46  ;;  %v897_v2 = vld [vmem:[%s1141_s28 + $0x40] sm:$0xff]   ;;  %s912_s28 = scalar_lea.vmem (%p419_p11), %s911_s29, 512  ;;  %p913_p1 = scmp.lt.s32.totalorder (%p419_p11), %s1174_s14, %s911_s29 }
 0x1ac   : >> { %814 = vmatpush3.bf16.msra.mxu1 %v897_v2  ;;  %p908_p13 = pnand (%p419_p11), %p907_p12, %p1057_p5  ;;  %p914_p2 = scmp.lt.s32.totalorder (%p419_p11), %s912_s28, %s906_s19 }
 0x1ad   : >> { %819 = vmatprep.subr.bf16.mxu1 %v989_v44 }
 0x1ae   : > { %p909_p0 = pneg (%p419_p11), %p908_p13  ;;  %p915_p3 = por (%p419_p11), %p914_p2, %p913_p1 }
 0x1b0   : > { %p916_p4 = pnand (%p419_p11), %p915_p3, %p909_p0 }
 0x1b2   : >> { %810 = vmatmul.mubr.msk.bf16.vlgmr.msra.gmra.mxu0 %vm450_vm4, %v896_v47 }
 0x272   : >> { %v491_v48 = vpop.f32.mrf.mxu0 }
 0x273   : >> { %v498_v49 = vmul.f32 0.35355338, %v491_v48 }
 0x274   : >> { %v811_v50 = vpop.f32.mrf.mxu0 }
 0x275   : >> { %v501_v51 = vsel %vm500_vm5, %v498_v49, -inf }
 0x276   : >> { %502 = vmax.xlane.f32.xlu0 %v501_v51  ;;  %v494_v52 = vpop.f32.mrf.mxu0 }
 0x277   : >> { %v499_v53 = vmul.f32 0.35355338, %v494_v52 }
 0x278   : >> { %v812_v54 = vpop.f32.mrf.mxu0 }
 0x279   : >> { %v504_v55 = vsel %vm500_vm5, %v499_v53, -inf }
 0x27a   : >> { %505 = vmax.xlane.f32.xlu0 %v504_v55 }
 0x2ff   : >> { %v503_v56 = vpop.xlane.xlu0 %502 }
 0x300   : >> { %v507_v57 = vsub.f32 %v498_v49, %v503_v56 }
 0x302   : >> { %v509_v58 = vmul.f32 1.442695, %v507_v57 }
 0x303   : >> { %v506_v59 = vpop.xlane.xlu0 %505 }
 0x304   : >> { %898 = vpow2.f32 %v509_v58  ;;  %v508_v60 = vsub.f32 %v499_v53, %v506_v59 }
 0x306   : >> { %v511_v61 = vmul.f32 1.442695, %v508_v60 }
 0x308   : >> { %900 = vpow2.f32 %v511_v61 }
 0x311   : >> { %v899_v62 = vpop.eup %898 }
 0x312   : >> { %v513_v63 = vsel %vm500_vm5, %v899_v62, 0.0 }
 0x313   : >> { %514 = vadd.xlane.f32.xlu1 %v513_v63 }
 0x315   : >> { %v901_v0 = vpop.eup %900 }
 0x316   : >> { %v516_v1 = vsel %vm500_vm5, %v901_v0, 0.0 }
 0x317   : >> { %517 = vadd.xlane.f32.xlu1 %v516_v1 }
 0x39c   : >> { %v515_v3 = vpop.xlane.xlu1 %514 }
 0x39d   : >> { %902 = vrcp.f32 %v515_v3 }
 0x3a0   : >> { %v518_v4 = vpop.xlane.xlu1 %517 }
 0x3a1   : >> { %904 = vrcp.f32 %v518_v4 }
 0x3aa   : >> { %v903_v5 = vpop.eup %902 }
 0x3ab   : >> { %v521_v8 = vmul.f32 %v903_v5, %v899_v62 }
 0x3ae   : >> { %v905_v6 = vpop.eup %904 }
 0x3af   : >> { %v522_v9 = vmul.f32 %v905_v6, %v901_v0 }
 0x3b1   : >> { %v523_v10 = vpack.c.bf16 %v522_v9, %v521_v8 }
 0x3b3   : >> { %816 = vmatmul.mubr.msk.bf16.vlgmr.msra.gmra.mxu1 %vm500_vm5, %v523_v10 }
 0x3b4   : >> { %820 = vmatpush3.bf16.msra.mxu1 %v585_v11  ;;  %821 = vmatprep.mubr.msk.bf16.mxu1 %vm990_vm3, %v989_v44 }
 0x473   : >> { %v567_v12 = vpop.f32.mrf.mxu1 }
 0x475   : >> { %v817_v13 = vpop.f32.mrf.mxu1 }
 0x477   : >> { %v570_v14 = vpop.f32.mrf.mxu1 }
 0x478   : >> { %v576_v15 = vpack.c.bf16 %v570_v14, %v567_v12 }
 0x479   : >> { %v818_v16 = vpop.f32.mrf.mxu1 }
 0x47a   : >> { %822 = vmatmul.mubr.msk.bf16.vlgmr.msra.gmra.mxu1 %vm450_vm4, %v576_v15 }
 0x53a   : >> { %v621_v18 = vpop.f32.mrf.mxu1 }
 0x53b   : >> { %v628_v19 = vadd.f32 %v621_v18, %v574_v17 }
 0x53c   : >> { %v823_v20 = vpop.f32.mrf.mxu1 }
 0x53d   : >> { %630 = vst.msk [vmem:[#allocation3] sm:$0xff] %vm242_vm0, %v628_v19 }
 0x53e   : >> { %v624_v22 = vpop.f32.mrf.mxu1 }
 0x53f   : >> { %v629_v23 = vadd.f32 %v624_v22, %v575_v21 }
 0x540   : >> { %v824_v24 = vpop.f32.mrf.mxu1 }
 0x541   : >> { %631 = vst.msk [vmem:[#allocation3 + $0x8] sm:$0xff] %vm242_vm0, %v629_v23  ;;  %421 = sbr.rel (!%p419_p11) target bundleno = 419 (0x1a3), region = 93 }
 0x544   : > { %v632_v25 = vld [vmem:[#allocation3] sm:$0xff] (%p419_p11) }
 0x545   : > { %v641_v28 = vadd.f32 (%p419_p11), %v767_v26, %v632_v25 }
 0x547   : > { %643 = vst.msk [vmem:[%s1131_s22] sm:$0xff] %vm242_vm0, %v641_v28 }
 0x548   : > { %v633_v27 = vld [vmem:[#allocation3 + $0x8] sm:$0xff] }
 0x549   : > { %v642_v29 = vadd.f32 %v767_v26, %v633_v27 }
 0x54b   : > { %644 = vst.msk [vmem:[%s1131_s22 + $0x8] sm:$0xff] %vm242_vm0, %v642_v29 }
 0x54c   : > { %919 = shalt.err (!%p916_p4)
}
 0x54d   : > { %s920_s27 = scalar_lea.hbm %s1171_s13, 256  ;;  %s924_s5 = scalar_lea.hbm %s1226_s4, 512 }
 0x54e   : > { %p921_p7 = scmp.ne.s32.totalorder %s1171_s13, %s920_s27  ;;  %p925_p10 = scmp.lt.s32.totalorder %s1171_s13, %s1226_s4 }
 0x54f   : > { %p926_p11 = scmp.lt.s32.totalorder %s924_s5, %s920_s27 }
 0x550   : > { %p922_p8 = pnand %p921_p7, %p1057_p5 }
 0x551   : > { %p927_p12 = por %p926_p11, %p925_p10 }
 0x552   : > { %p923_p9 = pneg %p922_p8 }
 0x554   : > { %p928_p13 = pnand %p927_p12, %p923_p9 }
 0x556   : > { %931 = shalt.err (!%p928_p13)
}
 0x557   : > { %s992_s8 = smov 128   ;;  %s993_s9 = smov 8  }
 0x558   : > { %825 = dma.vmem_to_hbm [thread:$0]  (%p1057_p5), %s1174_s14, 256, %s1171_s13, %s1182_s20, %s992_s8, %s992_s8, %s993_s9  }
 0x559 PF: > { %p831_p0 = scmp.ge.s32.totalorder %s970_s18, 2  ;;  %s674_s10 = sand.u32 1, %s958_s15  }
 0x55a   : > { %s675_s11 = scalar_lea.sflag [#allocation5], %s674_s10 }
 0x55b   : > { %p828_p1 = pnand %p831_p0, %p1061_p6 }
 0x55d   : > { %p829_p2 = pneg %p828_p1 }
 0x55f   : > { %953 = dma.done.wait (%p829_p2), %s675_s11, 256  }
 0x560   : > { %955 = vsyncadd (%p829_p2), %s675_s11, 4294967040  ;;  %p14_p3 = scmp.ge.s32.totalorder %s1044_s21, 4   ;;  %s1229_s15 = smov %s962_s16 }
 0x561   : > { %s1230_s16 = smov %s966_s17  ;;  %s1231_s17 = smov %s1055_s24 }
 0x562   : > { %s1232_s18 = smov %s1044_s21  ;;  %16 = sbr.rel (!%p14_p3) target bundleno = 3 (0x3), region = 104 }
 0x567   :  { %680 = vsyncpa [#allocation5], 1 }
 0x568   :  { %682 = vsyncpa [#allocation5 + $0x1], 1 }

</bundles_post_ra>
